<compile_context>
chip_gen: v7x
topology: tpu7x:2x2x1
jax: 0.10.0
libtpu: 0.0.40
codegen_flags: <defaults>
</compile_context>

<pallas_src>
import jax
import jax.numpy as jnp
from jax.experimental import pallas as pl
from jax.experimental.pallas import tpu as pltpu


def _round_down(x, m):
    return (x // m) * m


def _make_vef_kernel(n_limbs):
    """n_limbs=1: single bf16 MXU pass.  n_limbs=3: exact f32 via bf16 limbs."""

    def kernel(vox_ref, cnt_ref, red_ref, exp_ref, out_ref):
        # vox_ref: (R, g*T*C)  g voxels folded per row (lane-dense input)
        # cnt_ref: (R, g)      per-voxel point counts, bf16 (exact small ints)
        # red_ref: (g*T*C, g*C) constant 0/1 reduction matrix, bf16
        # exp_ref: (g, g*C)     constant 0/1 channel-broadcast matrix, bf16
        # out_ref: (R, g*C)     per-voxel, per-channel mean (128 dense lanes)
        red = red_ref[...]

        if n_limbs <= 1:
            # bf16 (or narrower) inputs: feed straight into the MXU,
            # f32 accumulation comes for free via preferred_element_type.
            s = jnp.dot(vox_ref[...].astype(red.dtype), red,
                        preferred_element_type=jnp.float32)
        else:
            # f32 inputs: split into bf16 limbs.  Every product with the 0/1
            # matrix is exact, so the limb sum reproduces the f32 sum to
            # ~2^-27 relative error using cheap bf16 MXU passes.
            resid = vox_ref[...].astype(jnp.float32)
            s = None
            for i in range(n_limbs):
                limb = resid.astype(jnp.bfloat16)
                part = jnp.dot(limb, red, preferred_element_type=jnp.float32)
                s = part if s is None else s + part
                if i + 1 < n_limbs:
                    resid = resid - limb.astype(jnp.float32)

        # Broadcast counts to the (v, c) output lanes (exact: small integers).
        cnt_b = jnp.dot(cnt_ref[...], exp_ref[...],
                        preferred_element_type=jnp.float32)
        out_ref[...] = (s / cnt_b).astype(out_ref.dtype)

    return kernel


def vef_forward(voxels, num_per_voxel, *, tile_rows=512):
    """Pallas implementation of VEF.forward.

    voxels:        (N, T, C) float array
    num_per_voxel: (N,)      integer array (1 <= count <= T)
    returns:       (N, C)    same dtype as voxels
    """
    N, T, C = voxels.shape
    out_dtype = voxels.dtype
    itemsize = jnp.dtype(voxels.dtype).itemsize

    # Fold g voxels per kernel row so the OUTPUT lane dim is a dense 128.
    g = (128 // C) if (0 < C <= 128 and 128 % C == 0) else 1
    n_main = (N // g) * g
    rows = n_main // g
    n_limbs = 1 if itemsize <= 2 else 3

    def _jnp_mean(v, n):
        return (v.astype(jnp.float32).sum(axis=1)
                / n.astype(jnp.float32)[:, None]).astype(out_dtype)

    if rows == 0:  # fewer voxels than one fold group: trivial jnp fallback
        return _jnp_mean(voxels, num_per_voxel)

    in_w = g * T * C          # streamed lane width  (1024 for T=8, C=4)
    out_w = g * C             # output lane width    (128)

    # Zero-copy fold when N % g == 0 (common case).  Otherwise the prefix is
    # sliced and the (< g)-voxel tail is handled with plain jnp below.
    if n_main == N:
        vox2d = voxels.reshape(rows, in_w)
        cnt1d = num_per_voxel
    else:
        vox2d = voxels[:n_main].reshape(rows, in_w)
        cnt1d = num_per_voxel[:n_main]
    # Counts are small integers (<= T), exactly representable in bf16.
    cnt2d = cnt1d.astype(jnp.bfloat16).reshape(rows, g)

    # Constant 0/1 matrices (bf16: products with them are exact on the MXU).
    red = jnp.kron(jnp.eye(g, dtype=jnp.bfloat16),
                   jnp.tile(jnp.eye(C, dtype=jnp.bfloat16), (T, 1)))  # (in_w, out_w)
    exp = jnp.kron(jnp.eye(g, dtype=jnp.bfloat16),
                   jnp.ones((1, C), dtype=jnp.bfloat16))              # (g, out_w)

    # Row-block size: dtype-aligned sublanes (8/16/32 for f32/bf16/int8),
    # ~2 MiB of voxel payload per step by default, capped at 4 MiB so
    # double buffers + limb temporaries fit v7x's 64 MiB VMEM comfortably.
    sub = max(8, 32 // itemsize)
    row_bytes = in_w * itemsize
    cap = max(sub, (4 << 20) // row_bytes)
    block_rows = max(sub, _round_down(min(int(tile_rows), cap), sub))
    if rows <= block_rows:
        block_rows = rows        # single full-extent block is always legal
    grid = (pl.cdiv(rows, block_rows),)   # partial last block -> masked writes

    # VMEM budget: double-buffered operands + in-body limb temporaries.
    vox_blk = block_rows * in_w * itemsize
    cnt_blk = block_rows * g * 2
    out_blk = block_rows * out_w * jnp.dtype(out_dtype).itemsize
    mat_b = (in_w + g) * out_w * 2
    limb_tmp = n_limbs * block_rows * in_w * 2 + 2 * block_rows * in_w * 4
    need = 2 * (vox_blk + cnt_blk + out_blk + mat_b) + limb_tmp + (2 << 20)
    vmem_limit = int(min(32 << 20, max(16 << 20, need)))

    cost = pl.CostEstimate(
        flops=int(rows * (2 * n_limbs * in_w * out_w + 2 * g * out_w + out_w)),
        transcendentals=int(rows * out_w),
        bytes_accessed=int(rows * (in_w * itemsize + g * 2
                                   + out_w * jnp.dtype(out_dtype).itemsize)
                           + mat_b),
    )

    out2d = pl.pallas_call(
        _make_vef_kernel(n_limbs),
        out_shape=jax.ShapeDtypeStruct((rows, out_w), out_dtype),
        grid_spec=pltpu.PrefetchScalarGridSpec(
            num_scalar_prefetch=0,
            grid=grid,
            in_specs=[
                pl.BlockSpec((block_rows, in_w), lambda i: (i, 0)),
                pl.BlockSpec((block_rows, g), lambda i: (i, 0)),
                pl.BlockSpec((in_w, out_w), lambda i: (0, 0)),   # resident
                pl.BlockSpec((g, out_w), lambda i: (0, 0)),      # resident
            ],
            out_specs=pl.BlockSpec((block_rows, out_w), lambda i: (i, 0)),
        ),
        compiler_params=pltpu.CompilerParams(
            dimension_semantics=("parallel",),   # megacore-shardable on v7x
            vmem_limit_bytes=vmem_limit,
        ),
        cost_estimate=cost,
    )(vox2d, cnt2d, red, exp)

    main = out2d.reshape(n_main, C)   # zero-copy unfold back to (n_main, C)
    if n_main == N:
        return main
    # Ragged tail (< g voxels): tiny, handled with plain jnp.
    tail = _jnp_mean(voxels[n_main:], num_per_voxel[n_main:])
    return jnp.concatenate([main, tail], axis=0)


if __name__ == "__main__":
    key = jax.random.PRNGKey(0)
    k1, k2, k3, k4 = jax.random.split(key, 4)

    T, C = 8, 4

    # Case 1: N a multiple of the 32-voxel fold -> fully zero-copy path.
    N1 = 128
    vox1 = jax.random.normal(k1, (N1, T, C), dtype=jnp.float32)
    cnt1 = jax.random.randint(k2, (N1,), 1, T + 1, dtype=jnp.int32)
    out1 = jax.block_until_ready(vef_forward(vox1, cnt1))
    ref1 = vox1.sum(axis=1) / cnt1.astype(vox1.dtype)[:, None]
    assert out1.shape == (N1, C) and out1.dtype == vox1.dtype
    assert jnp.allclose(out1, ref1, atol=1e-5, rtol=1e-5)

    # Case 2: ragged N (< 32-voxel tail) plus a partial last row-block
    # (rows=11, block_rows=8 -> masked writes on the second grid step).
    N2 = 360
    vox2 = jax.random.normal(k3, (N2, T, C), dtype=jnp.float32)
    cnt2 = jax.random.randint(k4, (N2,), 1, T + 1, dtype=jnp.int32)
    out2 = jax.block_until_ready(vef_forward(vox2, cnt2, tile_rows=8))
    ref2 = vox2.sum(axis=1) / cnt2.astype(vox2.dtype)[:, None]
    assert out2.shape == (N2, C)
    assert jnp.allclose(out2, ref2, atol=1e-5, rtol=1e-5)

    # TODO(synk): torch `.contiguous()` has no JAX equivalent (arrays are
    # already contiguous); it is intentionally a no-op here.
    print("KERNEL_OK")
</pallas_src>

<mosaic_0001>
module attributes {stable_mosaic.version = 11 : i64} {
  func.func @kernel(%arg0: i32, %arg1: memref<4x1024xf32, #tpu.memory_space<vmem>>, %arg2: memref<4x32xbf16, #tpu.memory_space<vmem>>, %arg3: memref<1024x128xbf16, #tpu.memory_space<vmem>>, %arg4: memref<32x128xbf16, #tpu.memory_space<vmem>>, %arg5: memref<4x128xf32, #tpu.memory_space<vmem>>) attributes {dimension_semantics = [#tpu.dimension_semantics<parallel>], iteration_bounds = array<i64: 1>, scalar_prefetch = 0 : i64, scratch_operands = 0 : i64, tpu.core_type = #tpu.core_type<tc>, window_params = [{transform_indices = @transform_0, window_bounds = array<i64: 4, 1024>}, {transform_indices = @transform_1, window_bounds = array<i64: 4, 32>}, {pipeline_mode = #tpu.pipeline_mode<synchronous>, transform_indices = @transform_2, window_bounds = array<i64: 1024, 128>}, {pipeline_mode = #tpu.pipeline_mode<synchronous>, transform_indices = @transform_3, window_bounds = array<i64: 32, 128>}, {transform_indices = @transform_4, window_bounds = array<i64: 4, 128>}]} {
    %c0 = arith.constant 0 : index
    %c0_0 = arith.constant 0 : index
    %0 = vector.load %arg3[%c0, %c0_0] : memref<1024x128xbf16, #tpu.memory_space<vmem>>, vector<1024x128xbf16>
    %c0_1 = arith.constant 0 : index
    %c0_2 = arith.constant 0 : index
    %1 = vector.load %arg1[%c0_1, %c0_2] : memref<4x1024xf32, #tpu.memory_space<vmem>>, vector<4x1024xf32>
    %2 = arith.truncf %1 : vector<4x1024xf32> to vector<4x1024xbf16>
    %cst = arith.constant dense<0.000000e+00> : vector<4x128xf32>
    %3 = tpu.matmul %2, %0, %cst {dimension_numbers = #tpu.dot_dimension_numbers<[1], [0], [0], [1], [0, 0, 1, 1], [], []>} : vector<4x1024xbf16>, vector<1024x128xbf16>, vector<4x128xf32> -> vector<4x128xf32>
    %4 = arith.extf %2 : vector<4x1024xbf16> to vector<4x1024xf32>
    %5 = arith.subf %1, %4 : vector<4x1024xf32>
    %6 = arith.truncf %5 : vector<4x1024xf32> to vector<4x1024xbf16>
    %cst_3 = arith.constant dense<0.000000e+00> : vector<4x128xf32>
    %7 = tpu.matmul %6, %0, %cst_3 {dimension_numbers = #tpu.dot_dimension_numbers<[1], [0], [0], [1], [0, 0, 1, 1], [], []>} : vector<4x1024xbf16>, vector<1024x128xbf16>, vector<4x128xf32> -> vector<4x128xf32>
    %8 = arith.addf %3, %7 : vector<4x128xf32>
    %9 = arith.extf %6 : vector<4x1024xbf16> to vector<4x1024xf32>
    %10 = arith.subf %5, %9 : vector<4x1024xf32>
    %11 = arith.truncf %10 : vector<4x1024xf32> to vector<4x1024xbf16>
    %cst_4 = arith.constant dense<0.000000e+00> : vector<4x128xf32>
    %12 = tpu.matmul %11, %0, %cst_4 {dimension_numbers = #tpu.dot_dimension_numbers<[1], [0], [0], [1], [0, 0, 1, 1], [], []>} : vector<4x1024xbf16>, vector<1024x128xbf16>, vector<4x128xf32> -> vector<4x128xf32>
    %13 = arith.addf %8, %12 : vector<4x128xf32>
    %c0_5 = arith.constant 0 : index
    %c0_6 = arith.constant 0 : index
    %14 = vector.load %arg2[%c0_5, %c0_6] : memref<4x32xbf16, #tpu.memory_space<vmem>>, vector<4x32xbf16>
    %c0_7 = arith.constant 0 : index
    %c0_8 = arith.constant 0 : index
    %15 = vector.load %arg4[%c0_7, %c0_8] : memref<32x128xbf16, #tpu.memory_space<vmem>>, vector<32x128xbf16>
    %cst_9 = arith.constant dense<0.000000e+00> : vector<4x128xf32>
    %16 = tpu.matmul %14, %15, %cst_9 {dimension_numbers = #tpu.dot_dimension_numbers<[1], [0], [0], [1], [0, 0, 1, 1], [], []>} : vector<4x32xbf16>, vector<32x128xbf16>, vector<4x128xf32> -> vector<4x128xf32>
    %17 = arith.divf %13, %16 : vector<4x128xf32>
    %c0_10 = arith.constant 0 : index
    %c0_11 = arith.constant 0 : index
    %18 = vector.load %arg5[%c0_10, %c0_11] : memref<4x128xf32, #tpu.memory_space<vmem>>, vector<4x128xf32>
    tpu.vector_store %arg5[%c0_10, %c0_11], %17 {strides = array<i32>} : memref<4x128xf32, #tpu.memory_space<vmem>>, vector<4x128xf32>,
    return
  }
  func.func @transform_0(%arg0: i32) -> (i32, i32) {
    %c0_i32 = arith.constant 0 : i32
    %c0_i32_0 = arith.constant 0 : i32
    return %arg0, %c0_i32 : i32, i32
  }
  func.func @transform_1(%arg0: i32) -> (i32, i32) {
    %c0_i32 = arith.constant 0 : i32
    %c0_i32_0 = arith.constant 0 : i32
    return %arg0, %c0_i32 : i32, i32
  }
  func.func @transform_2(%arg0: i32) -> (i32, i32) {
    %c0_i32 = arith.constant 0 : i32
    %c0_i32_0 = arith.constant 0 : i32
    %c0_i32_1 = arith.constant 0 : i32
    return %c0_i32, %c0_i32_0 : i32, i32
  }
  func.func @transform_3(%arg0: i32) -> (i32, i32) {
    %c0_i32 = arith.constant 0 : i32
    %c0_i32_0 = arith.constant 0 : i32
    %c0_i32_1 = arith.constant 0 : i32
    return %c0_i32, %c0_i32_0 : i32, i32
  }
  func.func @transform_4(%arg0: i32) -> (i32, i32) {
    %c0_i32 = arith.constant 0 : i32
    %c0_i32_0 = arith.constant 0 : i32
    return %arg0, %c0_i32 : i32, i32
  }
}

</mosaic_0001>

<bundles_post_ra>
// kernel: tpu_custom_call.1
= control target key start
LH: loop header
LB: loop body
LE: loop exit
PB: predicated region body
PF: predicated region fallthrough
CT: control target
= control target key end

     0   :  { %9 = vsyncpa [#allocation3], 0  ;;  %s2233_s0 = inlined_call_operand.hbm [shape: f32[4,1024], index: 0, kind: input, shape index: {}]   ;;  %s2234_s1 = inlined_call_operand.vmem [shape: bf16[4,32], index: 1, kind: input, shape index: {}]   ;;  %s2235_s2 = inlined_call_operand.hbm [shape: bf16[1024,128], index: 2, kind: input, shape index: {}]   ;;  %s2236_s3 = inlined_call_operand.hbm [shape: bf16[32,128], index: 3, kind: input, shape index: {}]   ;;  %s2237_s4 = inlined_call_operand.hbm [shape: f32[4,128], index: 4, kind: output, shape index: {}]  }
   0x1   :  { %10 = vsyncpa [#allocation6], 0 }
   0x2   :  { %11 = vsyncpa [#allocation4], 0  ;;  %s1767_s15 = smov [#allocation5]   ;;  %s1673_s19 = scalar_lea.hbm %s2235_s2, 8192 }
   0x3   :  { %s29_s16 = sshll.u32 %s1767_s15, 4  ;;  %p1674_p0 = scmp.ne.s32.totalorder %s2235_s2, %s1673_s19  ;;  %s30_s16 = int_to_ptr.vmem [resolvable:$true] %s29_s16 }
   0x4   :  { %p1677_p1 = scmp.lt.u32.totalorder %s1673_s19, %s2235_s2 }
   0x6   :  { %p1679_p2 = pnand %p1677_p1, %p1674_p0 }
   0x8   :  { %1682 = shalt.err (!%p1679_p2)
}
   0x9   :  { %s1683_s24 = scalar_lea.vmem %s30_s16, 8192  ;;  %p1688_p4 = scmp.lt.s32.totalorder %s30_s16, %s30_s16 }
   0xa   :  { %p1684_p3 = scmp.ne.s32.totalorder %s30_s16, %s1683_s24  ;;  %p1689_p5 = scmp.lt.s32.totalorder %s1683_s24, %s1683_s24 }
   0xc   :  { %p1690_p6 = por %p1689_p5, %p1688_p4 }
   0xe   :  { %p1691_p7 = pnand %p1690_p6, %p1684_p3 }
  0x10   :  { %1694 = shalt.err (!%p1691_p7)
}
  0x11   :  { %s1768_s25 = smov 64   ;;  %s1769_s26 = smov 4  }
  0x12   :  { %35 = dma.hbm_to_vmem [thread:$0]  %s2235_s2, 8192, %s30_s16, [#allocation6], %s1768_s25, %s1768_s25, %s1769_s26  }
  0x13   :  { %s1770_s29 = smov [#allocation2]   ;;  %s1771_s5 = smov [#allocation7]  }
  0x14   :  { %s18_s30 = sshll.u32 %s1770_s29, 4  ;;  %s41_s6 = sshll.u32 %s1771_s5, 4  ;;  %s19_s30 = int_to_ptr.vmem [resolvable:$true] %s18_s30  ;;  %s42_s6 = int_to_ptr.vmem [resolvable:$true] %s41_s6 }
  0x15   :  { %s1695_s9 = scalar_lea.hbm %s2233_s0, 512 }
  0x16   :  { %p1696_p8 = scmp.ne.s32.totalorder %s2233_s0, %s1695_s9  ;;  %p1699_p9 = scmp.lt.u32.totalorder %s1695_s9, %s2233_s0 }
  0x18   :  { %p1701_p10 = pnand %p1699_p9, %p1696_p8 }
  0x1a   :  { %1704 = shalt.err (!%p1701_p10)
}
  0x1b   :  { %s1705_s2 = scalar_lea.vmem %s19_s30, 512  ;;  %p1710_p12 = scmp.lt.s32.totalorder %s19_s30, %s19_s30 }
  0x1c   :  { %p1706_p11 = scmp.ne.s32.totalorder %s19_s30, %s1705_s2  ;;  %p1711_p13 = scmp.lt.s32.totalorder %s1705_s2, %s1705_s2 }
  0x1e   :  { %p1712_p0 = por %p1711_p13, %p1710_p12 }
  0x20   :  { %p1713_p1 = pnand %p1712_p0, %p1706_p11 }
  0x22   :  { %1716 = shalt.err (!%p1713_p1)
}
  0x23   :  { %21 = dma.hbm_to_vmem [thread:$0]  %s2233_s0, 512, %s19_s30, [#allocation3]  }
  0x24   :  { %s1717_s18 = scalar_lea.hbm %s2236_s3, 256 }
  0x25   :  { %p1718_p2 = scmp.ne.s32.totalorder %s2236_s3, %s1717_s18  ;;  %p1721_p3 = scmp.lt.u32.totalorder %s1717_s18, %s2236_s3 }
  0x27   :  { %p1723_p4 = pnand %p1721_p3, %p1718_p2 }
  0x29   :  { %1726 = shalt.err (!%p1723_p4)
}
  0x2a   :  { %s1727_s23 = scalar_lea.vmem %s42_s6, 256  ;;  %p1732_p6 = scmp.lt.s32.totalorder %s42_s6, %s42_s6 }
  0x2b   :  { %p1728_p5 = scmp.ne.s32.totalorder %s42_s6, %s1727_s23  ;;  %p1733_p7 = scmp.lt.s32.totalorder %s1727_s23, %s1727_s23 }
  0x2d   :  { %p1734_p8 = por %p1733_p7, %p1732_p6 }
  0x2f   :  { %p1735_p9 = pnand %p1734_p8, %p1728_p5 }
  0x31   :  { %1738 = shalt.err (!%p1735_p9)
}
  0x32   :  { %47 = dma.hbm_to_vmem [thread:$0]  %s2236_s3, 256, %s42_s6, [#allocation6], %s1768_s25, %s1768_s25, %s1769_s26  }
  0x33   :  { %1761 = dma.done.wait [#allocation3], 512  }
  0x34   :  { %1762 = vsyncadd [#allocation3], 4294966784 }
  0x35   :  { %1763 = dma.done.wait [#allocation6], 8448  }
  0x36   :  { %1764 = vsyncadd [#allocation6], 4294958848  ;;  %v1842_v0 = vld [vmem:[#allocation5 + $0x40] sm:$0xff]   ;;  %v1853_v4 = vld [vmem:[#allocation5 + $0x48] sm:$0xff]   ;;  %vm1773_vm0 = vmmov 0   ;;  %vm1188_vm1 = vcmask 261120  }
  0x37   :  { %v1844_v1 = vld [vmem:[#allocation5 + $0xc0] sm:$0xff]   ;;  %1318 = vmatprep.subr.bf16.mxu0 %v1842_v0  ;;  %v1856_v5 = vld [vmem:[#allocation5 + $0xc8] sm:$0xff]   ;;  %v1865_v8 = vld [vmem:[#allocation5 + $0x50] sm:$0xff]  }
  0x38   :  { %v1847_v2 = vld [vmem:[#allocation5] sm:$0xff]   ;;  %1340 = vmatprep.subr.bf16.mxu1 %v1844_v1  ;;  %v1859_v6 = vld [vmem:[#allocation5 + $0x8] sm:$0xff]   ;;  %v1868_v9 = vld [vmem:[#allocation5 + $0xd0] sm:$0xff]  }
  0x39   :  { %v1850_v3 = vld [vmem:[#allocation5 + $0x80] sm:$0xff]   ;;  %1319 = vmatpush3.bf16.msra.mxu0 %v1847_v2  ;;  %v1862_v7 = vld [vmem:[#allocation5 + $0x88] sm:$0xff]   ;;  %v1871_v10 = vld [vmem:[#allocation5 + $0x10] sm:$0xff]  }
  0x3a   :  { %1341 = vmatpush3.bf16.msra.mxu1 %v1850_v3  ;;  %1320 = vmatprep.subr.bf16.mxu0 %v1853_v4  ;;  %v1874_v11 = vld [vmem:[#allocation5 + $0x90] sm:$0xff]   ;;  %v1877_v12 = vld [vmem:[#allocation5 + $0x58] sm:$0xff]   ;;  %v1889_v16 = vld [vmem:[#allocation5 + $0x60] sm:$0xff]  }
  0x3b   :  { %1342 = vmatprep.subr.bf16.mxu1 %v1856_v5  ;;  %v1880_v13 = vld [vmem:[#allocation5 + $0xd8] sm:$0xff]   ;;  %v1892_v17 = vld [vmem:[#allocation5 + $0xe0] sm:$0xff]   ;;  %v1901_v20 = vld [vmem:[#allocation5 + $0x68] sm:$0xff]  }
  0x3c   :  { %v1883_v14 = vld [vmem:[#allocation5 + $0x18] sm:$0xff]   ;;  %v1895_v18 = vld [vmem:[#allocation5 + $0x20] sm:$0xff]   ;;  %v1904_v21 = vld [vmem:[#allocation5 + $0xe8] sm:$0xff]  }
  0x3d   :  { %1321 = vmatpush3.bf16.msra.mxu0 %v1859_v6  ;;  %v1886_v15 = vld [vmem:[#allocation5 + $0x98] sm:$0xff]   ;;  %v1898_v19 = vld [vmem:[#allocation5 + $0xa0] sm:$0xff]   ;;  %v1907_v22 = vld [vmem:[#allocation5 + $0x28] sm:$0xff]  }
  0x3e   :  { %1343 = vmatpush3.bf16.msra.mxu1 %v1862_v7  ;;  %1322 = vmatprep.subr.bf16.mxu0 %v1865_v8  ;;  %v1910_v23 = vld [vmem:[#allocation5 + $0xa8] sm:$0xff]   ;;  %v1913_v24 = vld [vmem:[#allocation5 + $0x70] sm:$0xff]   ;;  %v1925_v28 = vld [vmem:[#allocation5 + $0x78] sm:$0xff]  }
  0x3f   :  { %1344 = vmatprep.subr.bf16.mxu1 %v1868_v9  ;;  %v1916_v25 = vld [vmem:[#allocation5 + $0xf0] sm:$0xff]   ;;  %v1928_v29 = vld [vmem:[#allocation5 + $0xf8] sm:$0xff]   ;;  %v186_v32 = vld [vmem:[#allocation2] sm:$0xff] }
  0x40   :  { %v1919_v26 = vld [vmem:[#allocation5 + $0x30] sm:$0xff]   ;;  %v1931_v30 = vld [vmem:[#allocation5 + $0x38] sm:$0xff]   ;;  %v187_v33 = vld [vmem:[#allocation2 + $0x8] sm:$0xff]  ;;  %v194_v34 = vcombine.high %v186_v32, %v186_v32  ;;  %v1938_v35 = vpack.c.bf16 %v186_v32, %v186_v32 }
  0x41   :  { %1323 = vmatpush3.bf16.msra.mxu0 %v1871_v10  ;;  %v1922_v27 = vld [vmem:[#allocation5 + $0xb0] sm:$0xff]   ;;  %v1934_v31 = vld [vmem:[#allocation5 + $0xb8] sm:$0xff]   ;;  %v195_v36 = vcombine.high %v187_v33, %v187_v33  ;;  %v1940_v37 = vpack.c.bf16 %v187_v33, %v187_v33  ;;  %v1942_v38 = vld [vmem:[#allocation5 + $0x140] sm:$0xff]  }
  0x42   :  { %1345 = vmatpush3.bf16.msra.mxu1 %v1874_v11  ;;  %1324 = vmatprep.subr.bf16.mxu0 %v1877_v12  ;;  %v1944_v39 = vld [vmem:[#allocation5 + $0x1c0] sm:$0xff]   ;;  %v1946_v40 = vpack.c.bf16 %v194_v34, %v194_v34  ;;  %v210_v41 = vunpack.c.l.bf16 %v1938_v35  ;;  %v1960_v60 = vld [vmem:[#allocation5 + $0x148] sm:$0xff]  }
  0x43   :  { %1346 = vmatprep.subr.bf16.mxu1 %v1880_v13  ;;  %v1949_v42 = vpack.c.bf16 %v195_v36, %v195_v36  ;;  %v212_v43 = vunpack.c.l.bf16 %v1940_v37  ;;  %v1956_v54 = vld [vmem:[#allocation5 + $0x100] sm:$0xff]   ;;  %v1962_v61 = vld [vmem:[#allocation5 + $0x1c8] sm:$0xff]  }
  0x44   :  { %v211_v44 = vunpack.c.l.bf16 %v1946_v40  ;;  %v1958_v55 = vld [vmem:[#allocation5 + $0x180] sm:$0xff]  }
  0x45   :  { %1325 = vmatpush3.bf16.msra.mxu0 %v1883_v14  ;;  %v213_v45 = vunpack.c.l.bf16 %v1949_v42 }
  0x46   :  { %1347 = vmatpush3.bf16.msra.mxu1 %v1886_v15  ;;  %1326 = vmatprep.subr.bf16.mxu0 %v1889_v16  ;;  %v226_v46 = vcombine.low %v210_v41, %v211_v44  ;;  %v1970_v41 = vld [vmem:[#allocation5 + $0x150] sm:$0xff]  }
  0x47   :  { %1348 = vmatprep.subr.bf16.mxu1 %v1892_v17  ;;  %v227_v47 = vcombine.low %v212_v43, %v213_v45  ;;  %2287 = vst [vmem:[#allocation14_spill] sm:$0xff] %v1970_v41  ;;  %v1974_v43 = vld [vmem:[#allocation5 + $0x1d0] sm:$0xff]  }
  0x48   :  { %v234_v48 = vsub.f32 %v186_v32, %v226_v46  ;;  %v1964_v32 = vld [vmem:[#allocation5 + $0x108] sm:$0xff]   ;;  %2288 = vst [vmem:[#allocation15_spill] sm:$0xff] %v1974_v43  ;;  %v1976_v44 = vld [vmem:[#allocation5 + $0x110] sm:$0xff]  }
  0x49   :  { %1327 = vmatpush3.bf16.msra.mxu0 %v1895_v18  ;;  %v235_v49 = vsub.f32 %v187_v33, %v227_v47  ;;  %2285 = vst [vmem:[#allocation12_spill] sm:$0xff] %v1964_v32  ;;  %v1966_v33 = vld [vmem:[#allocation5 + $0x188] sm:$0xff]   ;;  %2289 = vst [vmem:[#allocation16_spill] sm:$0xff] %v1976_v44  ;;  %v1982_v47 = vld [vmem:[#allocation5 + $0x190] sm:$0xff]  }
  0x4a   :  { %1349 = vmatpush3.bf16.msra.mxu1 %v1898_v19  ;;  %1328 = vmatprep.subr.bf16.mxu0 %v1901_v20  ;;  %v242_v50 = vcombine.high %v234_v48, %v234_v48  ;;  %v250_v52 = vpack.c.bf16 %v234_v48, %v234_v48  ;;  %2286 = vst [vmem:[#allocation13_spill] sm:$0xff] %v1966_v33  ;;  %2292 = vst [vmem:[#allocation19_spill] sm:$0xff] %v1982_v47 }
  0x4b   :  { %1350 = vmatprep.subr.bf16.mxu1 %v1904_v21  ;;  %v243_v51 = vcombine.high %v235_v49, %v235_v49  ;;  %v252_v53 = vpack.c.bf16 %v235_v49, %v235_v49 }
  0x4c   :  { %v251_v56 = vpack.c.bf16 %v242_v50, %v242_v50  ;;  %v962_v58 = vunpack.c.l.bf16 %v250_v52  ;;  %v1986_v50 = vld [vmem:[#allocation5 + $0x158] sm:$0xff]  }
  0x4d   :  { %1329 = vmatpush3.bf16.msra.mxu0 %v1907_v22  ;;  %v253_v57 = vpack.c.bf16 %v243_v51, %v243_v51  ;;  %v964_v59 = vunpack.c.l.bf16 %v252_v53  ;;  %2293 = vst [vmem:[#allocation20_spill] sm:$0xff] %v1986_v50  ;;  %v1990_v51 = vld [vmem:[#allocation5 + $0x1d8] sm:$0xff]  }
  0x4e   :  { %1351 = vmatpush3.bf16.msra.mxu1 %v1910_v23  ;;  %1330 = vmatprep.subr.bf16.mxu0 %v1913_v24  ;;  %v963_v62 = vunpack.c.l.bf16 %v251_v56  ;;  %2294 = vst [vmem:[#allocation21_spill] sm:$0xff] %v1990_v51 }
  0x4f   :  { %1352 = vmatprep.subr.bf16.mxu1 %v1916_v25  ;;  %674 = vmatprep.mubr.bf16.mxu0 %v251_v56  ;;  %v965_v63 = vunpack.c.l.bf16 %v253_v57  ;;  %v2004_v56 = vld [vmem:[#allocation5 + $0x120] sm:$0xff]  }
  0x50   :  { %714 = vmatprep.mubr.bf16.mxu1 %v253_v57  ;;  %v978_v34 = vcombine.low %v962_v58, %v963_v62  ;;  %2299 = vst [vmem:[#allocation26_spill] sm:$0xff] %v2004_v56  ;;  %v2006_v57 = vld [vmem:[#allocation5 + $0x1a0] sm:$0xff]   ;;  %v2010_v58 = vld [vmem:[#allocation5 + $0x168] sm:$0xff]  }
  0x51   :  { %1331 = vmatpush3.bf16.msra.mxu0 %v1919_v26  ;;  %v979_v36 = vcombine.low %v964_v59, %v965_v63  ;;  %2300 = vst [vmem:[#allocation27_spill] sm:$0xff] %v2006_v57  ;;  %2301 = vst [vmem:[#allocation28_spill] sm:$0xff] %v2010_v58  ;;  %v2014_v59 = vld [vmem:[#allocation5 + $0x1e8] sm:$0xff]  }
  0x52   :  { %1353 = vmatpush3.bf16.msra.mxu1 %v1922_v27  ;;  %1332 = vmatprep.subr.bf16.mxu0 %v1925_v28  ;;  %v1978_v45 = vsub.f32 %v234_v48, %v978_v34  ;;  %v1994_v48 = vld [vmem:[#allocation5 + $0x198] sm:$0xff]   ;;  %2302 = vst [vmem:[#allocation29_spill] sm:$0xff] %v2014_v59  ;;  %v2016_v62 = vld [vmem:[#allocation5 + $0x128] sm:$0xff]   ;;  %v2020_v34 = vld [vmem:[#allocation5 + $0x170] sm:$0xff]  }
  0x53   :  { %1354 = vmatprep.subr.bf16.mxu1 %v1928_v29  ;;  %v1980_v46 = vsub.f32 %v235_v49, %v979_v36  ;;  %2296 = vst [vmem:[#allocation23_spill] sm:$0xff] %v1994_v48  ;;  %v1998_v49 = vld [vmem:[#allocation5 + $0x160] sm:$0xff]   ;;  %2303 = vst [vmem:[#allocation30_spill] sm:$0xff] %v2016_v62  ;;  %v2018_v63 = vld [vmem:[#allocation5 + $0x1a8] sm:$0xff]  }
  0x54   :  { %2290 = vst [vmem:[#allocation17_spill] sm:$0xff] %v1978_v45  ;;  %2297 = vst [vmem:[#allocation24_spill] sm:$0xff] %v1998_v49  ;;  %v188_v36 = vld [vmem:[#allocation2 + $0x10] sm:$0xff] }
  0x55   :  { %1333 = vmatpush3.bf16.msra.mxu0 %v1931_v30  ;;  %2291 = vst [vmem:[#allocation18_spill] sm:$0xff] %v1980_v46  ;;  %2304 = vst [vmem:[#allocation31_spill] sm:$0xff] %v2018_v63  ;;  %v196_v46 = vcombine.high %v188_v36, %v188_v36  ;;  %v2024_v45 = vpack.c.bf16 %v188_v36, %v188_v36 }
  0x56   :  { %1355 = vmatpush3.bf16.msra.mxu1 %v1934_v31  ;;  %1362 = vmatprep.subr.bf16.mxu0 %v1942_v38  ;;  %2305 = vst [vmem:[#allocation32_spill] sm:$0xff] %v2020_v34 }
  0x57   :  { %1384 = vmatprep.subr.bf16.mxu1 %v1944_v39  ;;  %2306 = vst [vmem:[#allocation33_spill] sm:$0xff] %v2024_v45 }
  0x58   :  { %675 = vmatmul.mubr.bf16.vlgmr.msra.gmra.mrb[0].mxu0 %v250_v52  ;;  %v1992_v52 = vld [vmem:[#allocation5 + $0x118] sm:$0xff]  }
  0x59   :  { %715 = vmatmul.mubr.bf16.vlgmr.msra.gmra.mrb[0].mxu1 %v252_v53  ;;  %1363 = vmatpush3.bf16.msra.mxu0 %v1956_v54  ;;  %2295 = vst [vmem:[#allocation22_spill] sm:$0xff] %v1992_v52  ;;  %v2002_v53 = vld [vmem:[#allocation5 + $0x1e0] sm:$0xff]  }
  0x5a   :  { %1385 = vmatpush3.bf16.msra.mxu1 %v1958_v55  ;;  %1364 = vmatprep.subr.bf16.mxu0 %v1960_v60  ;;  %2298 = vst [vmem:[#allocation25_spill] sm:$0xff] %v2002_v53 }
  0x5b   :  { %1386 = vmatprep.subr.bf16.mxu1 %v1962_v61 }
  0x5d   :  { %1365 = vmatpush3.bf16.msra.mxu0 %v1964_v32 }
  0x5e   :  { %1387 = vmatpush3.bf16.msra.mxu1 %v1966_v33  ;;  %1366 = vmatprep.subr.bf16.mxu0 %v1970_v41 }
  0x5f   :  { %1388 = vmatprep.subr.bf16.mxu1 %v1974_v43 }
  0x61   :  { %1367 = vmatpush3.bf16.msra.mxu0 %v1976_v44  ;;  %v2056_v44 = vld [vmem:[#allocation5 + $0x1b8] sm:$0xff]  }
  0x62   :  { %1389 = vmatpush3.bf16.msra.mxu1 %v1982_v47  ;;  %1368 = vmatprep.subr.bf16.mxu0 %v1986_v50  ;;  %v214_v50 = vunpack.c.l.bf16 %v2024_v45 }
  0x63   :  { %1390 = vmatprep.subr.bf16.mxu1 %v1990_v51  ;;  %v2032_v51 = vpack.c.bf16 %v196_v46, %v196_v46  ;;  %v2047_v46 = vld [vmem:[#allocation5 + $0x178] sm:$0xff]  }
  0x64   :  { %2311 = vst [vmem:[#allocation38_spill] sm:$0xff] %v2047_v46 }
  0x65   :  { %1369 = vmatpush3.bf16.msra.mxu0 %v1992_v52  ;;  %v215_v47 = vunpack.c.l.bf16 %v2032_v51 }
  0x66   :  { %1391 = vmatpush3.bf16.msra.mxu1 %v1994_v48  ;;  %1370 = vmatprep.subr.bf16.mxu0 %v1998_v49  ;;  %v189_v48 = vld [vmem:[#allocation2 + $0x18] sm:$0xff] }
  0x67   :  { %1392 = vmatprep.subr.bf16.mxu1 %v2002_v53  ;;  %v2028_v53 = vld [vmem:[#allocation5 + $0x1f0] sm:$0xff]   ;;  %v197_v49 = vcombine.high %v189_v48, %v189_v48  ;;  %v2030_v52 = vpack.c.bf16 %v189_v48, %v189_v48  ;;  %v228_v45 = vcombine.low %v214_v50, %v215_v47 }
  0x68   :  { %2307 = vst [vmem:[#allocation34_spill] sm:$0xff] %v2028_v53 }
  0x69   :  { %1371 = vmatpush3.bf16.msra.mxu0 %v2004_v56  ;;  %2308 = vst [vmem:[#allocation35_spill] sm:$0xff] %v2030_v52  ;;  %v2035_v56 = vpack.c.bf16 %v197_v49, %v197_v49  ;;  %v2049_v49 = vld [vmem:[#allocation5 + $0x1f8] sm:$0xff]   ;;  %v236_v43 = vsub.f32 %v188_v36, %v228_v45 }
  0x6a   :  { %1393 = vmatpush3.bf16.msra.mxu1 %v2006_v57  ;;  %1372 = vmatprep.subr.bf16.mxu0 %v2010_v58  ;;  %v216_v57 = vunpack.c.l.bf16 %v2030_v52  ;;  %v2040_v58 = vld [vmem:[#allocation5 + $0x130] sm:$0xff]   ;;  %v2319_v36 = vld [vmem:[#allocation21_spill] sm:$0xff] }
  0x6b   :  { %1394 = vmatprep.subr.bf16.mxu1 %v2014_v59  ;;  %2309 = vst [vmem:[#allocation36_spill] sm:$0xff] %v2040_v58  ;;  %v2042_v59 = vld [vmem:[#allocation5 + $0x1b0] sm:$0xff]   ;;  %v217_v52 = vunpack.c.l.bf16 %v2035_v56  ;;  %v254_v41 = vpack.c.bf16 %v236_v43, %v236_v43 }
  0x6c   :  { %2310 = vst [vmem:[#allocation37_spill] sm:$0xff] %v2042_v59 }
  0x6d   :  { %1373 = vmatpush3.bf16.msra.mxu0 %v2016_v62  ;;  %v229_v62 = vcombine.low %v216_v57, %v217_v52  ;;  %v966_v50 = vunpack.c.l.bf16 %v254_v41 }
  0x6e   :  { %1395 = vmatpush3.bf16.msra.mxu1 %v2018_v63  ;;  %1374 = vmatprep.subr.bf16.mxu0 %v2020_v34  ;;  %v2054_v63 = vld [vmem:[#allocation5 + $0x138] sm:$0xff]   ;;  %v244_v34 = vcombine.high %v236_v43, %v236_v43 }
  0x6f   :  { %1396 = vmatprep.subr.bf16.mxu1 %v2028_v53  ;;  %v237_v53 = vsub.f32 %v189_v48, %v229_v62 }
  0x70   :  { %v255_v47 = vpack.c.bf16 %v244_v34, %v244_v34 }
  0x71   :  { %1375 = vmatpush3.bf16.msra.mxu0 %v2040_v58  ;;  %v245_v33 = vcombine.high %v237_v53, %v237_v53  ;;  %v256_v32 = vpack.c.bf16 %v237_v53, %v237_v53 }
  0x72   :  { %1397 = vmatpush3.bf16.msra.mxu1 %v2042_v59  ;;  %1376 = vmatprep.subr.bf16.mxu0 %v2047_v46  ;;  %v967_v57 = vunpack.c.l.bf16 %v255_v47 }
  0x73   :  { %1398 = vmatprep.subr.bf16.mxu1 %v2049_v49  ;;  %v257_v52 = vpack.c.bf16 %v245_v33, %v245_v33  ;;  %v968_v45 = vunpack.c.l.bf16 %v256_v32  ;;  %754 = vmatprep.mubr.bf16.mxu0 %v255_v47  ;;  %v2320_v47 = vld [vmem:[#allocation22_spill] sm:$0xff] }
  0x74   :  { %v980_v62 = vcombine.low %v966_v50, %v967_v57  ;;  %v2323_v50 = vld [vmem:[#allocation25_spill] sm:$0xff]  ;;  %v2326_v57 = vld [vmem:[#allocation28_spill] sm:$0xff] }
  0x75   :  { %1377 = vmatpush3.bf16.msra.mxu0 %v2054_v63  ;;  %794 = vmatprep.mubr.bf16.mxu1 %v257_v52  ;;  %v969_v48 = vunpack.c.l.bf16 %v257_v52  ;;  %v2324_v52 = vld [vmem:[#allocation26_spill] sm:$0xff] }
  0x76   :  { %1399 = vmatpush3.bf16.msra.mxu1 %v2056_v44  ;;  %1406 = vmatprep.subr.bf16.mxu0 %v1842_v0  ;;  %v2069_v33 = vsub.f32 %v236_v43, %v980_v62  ;;  %v2317_v43 = vld [vmem:[#allocation19_spill] sm:$0xff]  ;;  %v2328_v62 = vld [vmem:[#allocation30_spill] sm:$0xff] }
  0x77   :  { %1428 = vmatprep.subr.bf16.mxu1 %v1844_v1  ;;  %v981_v34 = vcombine.low %v968_v45, %v969_v48  ;;  %v2325_v45 = vld [vmem:[#allocation27_spill] sm:$0xff]  ;;  %v2327_v48 = vld [vmem:[#allocation29_spill] sm:$0xff] }
  0x78   :  { %755 = vmatmul.mubr.bf16.vlgmr.msra.gmra.mrb[4].mxu0 %v254_v41 }
  0x79   :  { %795 = vmatmul.mubr.bf16.vlgmr.msra.gmra.mrb[4].mxu1 %v256_v32  ;;  %1407 = vmatpush3.bf16.msra.mxu0 %v1847_v2  ;;  %v2072_v41 = vsub.f32 %v237_v53, %v981_v34  ;;  %v2314_v32 = vld [vmem:[#allocation14_spill] sm:$0xff]  ;;  %v2318_v53 = vld [vmem:[#allocation20_spill] sm:$0xff]  ;;  %v2329_v34 = vld [vmem:[#allocation31_spill] sm:$0xff] }
  0x7a   :  { %1429 = vmatpush3.bf16.msra.mxu1 %v1850_v3  ;;  %1408 = vmatprep.subr.bf16.mxu0 %v1853_v4 }
  0x7b   :  { %1430 = vmatprep.subr.bf16.mxu1 %v1856_v5  ;;  %834 = vmatprep.mubr.bf16.mxu0 %v1946_v40  ;;  %v2312_v40 = vld [vmem:[#allocation12_spill] sm:$0xff] }
  0x7c   :  { %874 = vmatprep.mubr.bf16.mxu1 %v1949_v42  ;;  %v2313_v42 = vld [vmem:[#allocation13_spill] sm:$0xff] }
  0x7d   :  { %1409 = vmatpush3.bf16.msra.mxu0 %v1859_v6 }
  0x7e   :  { %1431 = vmatpush3.bf16.msra.mxu1 %v1862_v7  ;;  %1410 = vmatprep.subr.bf16.mxu0 %v1865_v8 }
  0x7f   :  { %1432 = vmatprep.subr.bf16.mxu1 %v1868_v9 }
  0x81   :  { %1411 = vmatpush3.bf16.msra.mxu0 %v1871_v10 }
  0x82   :  { %1433 = vmatpush3.bf16.msra.mxu1 %v1874_v11  ;;  %1412 = vmatprep.subr.bf16.mxu0 %v1877_v12 }
  0x83   :  { %1434 = vmatprep.subr.bf16.mxu1 %v1880_v13 }
  0x85   :  { %1413 = vmatpush3.bf16.msra.mxu0 %v1883_v14 }
  0x86   :  { %1435 = vmatpush3.bf16.msra.mxu1 %v1886_v15  ;;  %1414 = vmatprep.subr.bf16.mxu0 %v1889_v16 }
  0x87   :  { %1436 = vmatprep.subr.bf16.mxu1 %v1892_v17 }
  0x89   :  { %1415 = vmatpush3.bf16.msra.mxu0 %v1895_v18 }
  0x8a   :  { %1437 = vmatpush3.bf16.msra.mxu1 %v1898_v19  ;;  %1416 = vmatprep.subr.bf16.mxu0 %v1901_v20 }
  0x8b   :  { %1438 = vmatprep.subr.bf16.mxu1 %v1904_v21 }
  0x8d   :  { %1417 = vmatpush3.bf16.msra.mxu0 %v1907_v22 }
  0x8e   :  { %1439 = vmatpush3.bf16.msra.mxu1 %v1910_v23  ;;  %1418 = vmatprep.subr.bf16.mxu0 %v1913_v24 }
  0x8f   :  { %1440 = vmatprep.subr.bf16.mxu1 %v1916_v25 }
  0x91   :  { %1419 = vmatpush3.bf16.msra.mxu0 %v1919_v26 }
  0x92   :  { %1441 = vmatpush3.bf16.msra.mxu1 %v1922_v27  ;;  %1420 = vmatprep.subr.bf16.mxu0 %v1925_v28 }
  0x93   :  { %1442 = vmatprep.subr.bf16.mxu1 %v1928_v29 }
  0x95   :  { %1421 = vmatpush3.bf16.msra.mxu0 %v1931_v30 }
  0x96   :  { %1443 = vmatpush3.bf16.msra.mxu1 %v1934_v31  ;;  %1450 = vmatprep.subr.bf16.mxu0 %v1942_v38 }
  0x97   :  { %1472 = vmatprep.subr.bf16.mxu1 %v1944_v39 }
  0x98   :  { %835 = vmatmul.mubr.bf16.vlgmr.msra.gmra.mrb[8].mxu0 %v1938_v35  ;;  %v2315_v35 = vld [vmem:[#allocation15_spill] sm:$0xff] }
  0x99   :  { %875 = vmatmul.mubr.bf16.vlgmr.msra.gmra.mrb[8].mxu1 %v1940_v37  ;;  %1451 = vmatpush3.bf16.msra.mxu0 %v1956_v54  ;;  %v2316_v37 = vld [vmem:[#allocation16_spill] sm:$0xff] }
  0x9a   :  { %1473 = vmatpush3.bf16.msra.mxu1 %v1958_v55  ;;  %1452 = vmatprep.subr.bf16.mxu0 %v1960_v60 }
  0x9b   :  { %1474 = vmatprep.subr.bf16.mxu1 %v1962_v61  ;;  %914 = vmatprep.mubr.bf16.mxu0 %v2032_v51  ;;  %v2321_v51 = vld [vmem:[#allocation23_spill] sm:$0xff] }
  0x9c   :  { %954 = vmatprep.mubr.bf16.mxu1 %v2035_v56  ;;  %v2322_v56 = vld [vmem:[#allocation24_spill] sm:$0xff] }
  0x9d   :  { %1453 = vmatpush3.bf16.msra.mxu0 %v2312_v40 }
  0x9e   :  { %1475 = vmatpush3.bf16.msra.mxu1 %v2313_v42  ;;  %1454 = vmatprep.subr.bf16.mxu0 %v2314_v32 }
  0x9f   :  { %1476 = vmatprep.subr.bf16.mxu1 %v2315_v35 }
  0xa1   :  { %1455 = vmatpush3.bf16.msra.mxu0 %v2316_v37 }
  0xa2   :  { %1477 = vmatpush3.bf16.msra.mxu1 %v2317_v43  ;;  %1456 = vmatprep.subr.bf16.mxu0 %v2318_v53 }
  0xa3   :  { %1478 = vmatprep.subr.bf16.mxu1 %v2319_v36  ;;  %v2330_v36 = vld [vmem:[#allocation32_spill] sm:$0xff] }
  0xa5   :  { %1457 = vmatpush3.bf16.msra.mxu0 %v2320_v47  ;;  %v2331_v47 = vld [vmem:[#allocation34_spill] sm:$0xff] }
  0xa6   :  { %1479 = vmatpush3.bf16.msra.mxu1 %v2321_v51  ;;  %1458 = vmatprep.subr.bf16.mxu0 %v2322_v56 }
  0xa7   :  { %1480 = vmatprep.subr.bf16.mxu1 %v2323_v50 }
  0xa9   :  { %1459 = vmatpush3.bf16.msra.mxu0 %v2324_v52 }
  0xaa   :  { %1481 = vmatpush3.bf16.msra.mxu1 %v2325_v45  ;;  %1460 = vmatprep.subr.bf16.mxu0 %v2326_v57  ;;  %v2332_v45 = vld [vmem:[#allocation17_spill] sm:$0xff] }
  0xab   :  { %1482 = vmatprep.subr.bf16.mxu1 %v2327_v48  ;;  %v994_v57 = vcombine.high %v2332_v45, %v2332_v45  ;;  %v2333_v48 = vld [vmem:[#allocation18_spill] sm:$0xff] }
  0xad   :  { %1461 = vmatpush3.bf16.msra.mxu0 %v2328_v62  ;;  %v995_v62 = vcombine.high %v2333_v48, %v2333_v48 }
  0xae   :  { %1483 = vmatpush3.bf16.msra.mxu1 %v2329_v34  ;;  %1462 = vmatprep.subr.bf16.mxu0 %v2330_v36 }
  0xaf   :  { %1484 = vmatprep.subr.bf16.mxu1 %v2331_v47  ;;  %v2335_v47 = vld [vmem:[#allocation35_spill] sm:$0xff] }
  0xb1   :  { %1463 = vmatpush3.bf16.msra.mxu0 %v2040_v58  ;;  %v1003_v58 = vpack.c.bf16 %v994_v57, %v994_v57 }
  0xb2   :  { %1485 = vmatpush3.bf16.msra.mxu1 %v2042_v59  ;;  %1464 = vmatprep.subr.bf16.mxu0 %v2047_v46  ;;  %v2334_v59 = vld [vmem:[#allocation33_spill] sm:$0xff]  ;;  %v1005_v46 = vpack.c.bf16 %v995_v62, %v995_v62 }
  0xb3   :  { %1486 = vmatprep.subr.bf16.mxu1 %v2049_v49 }
  0xb5   :  { %1465 = vmatpush3.bf16.msra.mxu0 %v2054_v63 }
  0xb6   :  { %1487 = vmatpush3.bf16.msra.mxu1 %v2056_v44  ;;  %1494 = vmatprep.subr.bf16.mxu0 %v1842_v0  ;;  %v996_v0 = vcombine.high %v2069_v33, %v2069_v33 }
  0xb7   :  { %1516 = vmatprep.subr.bf16.mxu1 %v1844_v1  ;;  %v1002_v1 = vpack.c.bf16 %v2332_v45, %v2332_v45 }
  0xb8   :  { %915 = vmatmul.mubr.bf16.vlgmr.msra.gmra.mrb[12].mxu0 %v2334_v59 }
  0xb9   :  { %955 = vmatmul.mubr.bf16.vlgmr.msra.gmra.mrb[12].mxu1 %v2335_v47  ;;  %1495 = vmatpush3.bf16.msra.mxu0 %v1847_v2  ;;  %v997_v2 = vcombine.high %v2072_v41, %v2072_v41 }
  0xba   :  { %1517 = vmatpush3.bf16.msra.mxu1 %v1850_v3  ;;  %1496 = vmatprep.subr.bf16.mxu0 %v1853_v4  ;;  %v1004_v3 = vpack.c.bf16 %v2333_v48, %v2333_v48  ;;  %v1007_v4 = vpack.c.bf16 %v996_v0, %v996_v0 }
  0xbb   :  { %1518 = vmatprep.subr.bf16.mxu1 %v1856_v5  ;;  %1042 = vmatprep.mubr.bf16.mxu0 %v1003_v58  ;;  %v1009_v5 = vpack.c.bf16 %v997_v2, %v997_v2 }
  0xbc   :  { %1082 = vmatprep.mubr.bf16.mxu1 %v1005_v46 }
  0xbd   :  { %1497 = vmatpush3.bf16.msra.mxu0 %v1859_v6  ;;  %v2336_v6 = vld [vmem:[#allocation21_spill] sm:$0xff] }
  0xbe   :  { %1519 = vmatpush3.bf16.msra.mxu1 %v1862_v7  ;;  %1498 = vmatprep.subr.bf16.mxu0 %v1865_v8  ;;  %v2337_v7 = vld [vmem:[#allocation22_spill] sm:$0xff]  ;;  %v2338_v8 = vld [vmem:[#allocation27_spill] sm:$0xff] }
  0xbf   :  { %1520 = vmatprep.subr.bf16.mxu1 %v1868_v9  ;;  %v2339_v9 = vld [vmem:[#allocation28_spill] sm:$0xff] }
  0xc1   :  { %1499 = vmatpush3.bf16.msra.mxu0 %v1871_v10  ;;  %v2340_v10 = vld [vmem:[#allocation29_spill] sm:$0xff] }
  0xc2   :  { %1521 = vmatpush3.bf16.msra.mxu1 %v1874_v11  ;;  %1500 = vmatprep.subr.bf16.mxu0 %v1877_v12  ;;  %v2341_v11 = vld [vmem:[#allocation30_spill] sm:$0xff] }
  0xc3   :  { %1522 = vmatprep.subr.bf16.mxu1 %v1880_v13  ;;  %v2342_v12 = vld [vmem:[#allocation34_spill] sm:$0xff]  ;;  %v2343_v13 = vld [vmem:[#allocation36_spill] sm:$0xff] }
  0xc5   :  { %1501 = vmatpush3.bf16.msra.mxu0 %v1883_v14  ;;  %v2344_v14 = vld [vmem:[#allocation37_spill] sm:$0xff] }
  0xc6   :  { %1523 = vmatpush3.bf16.msra.mxu1 %v1886_v15  ;;  %1502 = vmatprep.subr.bf16.mxu0 %v1889_v16  ;;  %v2345_v15 = vld [vmem:[#allocation38_spill] sm:$0xff]  ;;  %v1006_v16 = vpack.c.bf16 %v2069_v33, %v2069_v33 }
  0xc7   :  { %1524 = vmatprep.subr.bf16.mxu1 %v1892_v17  ;;  %v1669_v17 = vld [vmem:[#allocation7] sm:$0xff]  }
  0xc9   :  { %1503 = vmatpush3.bf16.msra.mxu0 %v1895_v18  ;;  %v1008_v18 = vpack.c.bf16 %v2072_v41, %v2072_v41 }
  0xca   :  { %1525 = vmatpush3.bf16.msra.mxu1 %v1898_v19  ;;  %1504 = vmatprep.subr.bf16.mxu0 %v1901_v20  ;;  %v1772_v19 = vmov 0.0   ;;  %v1670_v20 = vld [vmem:[#allocation7 + $0x8] sm:$0xff]  }
  0xcb   :  { %1526 = vmatprep.subr.bf16.mxu1 %v1904_v21  ;;  %v1171_v21 = vld [vmem:[%s2234_s1] sm:$0x3]  ;;  %s1774_s1 = smov [#allocation8]  }
  0xcc   :  { %s1241_s26 = sshll.u32 %s1774_s1, 4  ;;  %s1242_s26 = int_to_ptr.vmem [resolvable:$true] %s1241_s26 }
  0xcd   :  { %1505 = vmatpush3.bf16.msra.mxu0 %v1907_v22  ;;  %s1739_s27 = scalar_lea.vmem %s1242_s26, 64  ;;  %p1744_p11 = scmp.lt.s32.totalorder %s1242_s26, %s1242_s26 }
  0xce   :  { %1527 = vmatpush3.bf16.msra.mxu1 %v1910_v23  ;;  %1506 = vmatprep.subr.bf16.mxu0 %v1913_v24  ;;  %p1740_p10 = scmp.ne.s32.totalorder %s1242_s26, %s1739_s27  ;;  %p1745_p12 = scmp.lt.s32.totalorder %s1739_s27, %s1739_s27 }
  0xcf   :  { %1528 = vmatprep.subr.bf16.mxu1 %v1916_v25 }
  0xd0   :  { %p1746_p13 = por %p1745_p12, %p1744_p11 }
  0xd1   :  { %1507 = vmatpush3.bf16.msra.mxu0 %v1919_v26 }
  0xd2   :  { %1529 = vmatpush3.bf16.msra.mxu1 %v1922_v27  ;;  %1508 = vmatprep.subr.bf16.mxu0 %v1925_v28  ;;  %p1747_p0 = pnand %p1746_p13, %p1740_p10 }
  0xd3   :  { %1530 = vmatprep.subr.bf16.mxu1 %v1928_v29 }
  0xd5   :  { %1509 = vmatpush3.bf16.msra.mxu0 %v1931_v30 }
  0xd6   :  { %1531 = vmatpush3.bf16.msra.mxu1 %v1934_v31  ;;  %1538 = vmatprep.subr.bf16.mxu0 %v1942_v38 }
  0xd7   :  { %1560 = vmatprep.subr.bf16.mxu1 %v1944_v39 }
  0xd8   :  { %1043 = vmatmul.mubr.bf16.vlgmr.msra.gmra.mrb[16].mxu0 %v1002_v1 }
  0xd9   :  { %1083 = vmatmul.mubr.bf16.vlgmr.msra.gmra.mrb[16].mxu1 %v1004_v3  ;;  %1539 = vmatpush3.bf16.msra.mxu0 %v1956_v54 }
  0xda   :  { %1561 = vmatpush3.bf16.msra.mxu1 %v1958_v55  ;;  %1540 = vmatprep.subr.bf16.mxu0 %v1960_v60 }
  0xdb   :  { %1562 = vmatprep.subr.bf16.mxu1 %v1962_v61  ;;  %1122 = vmatprep.mubr.bf16.mxu0 %v1007_v4 }
  0xdc   :  { %1162 = vmatprep.mubr.bf16.mxu1 %v1009_v5 }
  0xdd   :  { %1541 = vmatpush3.bf16.msra.mxu0 %v2312_v40 }
  0xde   :  { %1563 = vmatpush3.bf16.msra.mxu1 %v2313_v42  ;;  %1542 = vmatprep.subr.bf16.mxu0 %v2314_v32 }
  0xdf   :  { %1564 = vmatprep.subr.bf16.mxu1 %v2315_v35 }
  0xe1   :  { %1543 = vmatpush3.bf16.msra.mxu0 %v2316_v37 }
  0xe2   :  { %1565 = vmatpush3.bf16.msra.mxu1 %v2317_v43  ;;  %1544 = vmatprep.subr.bf16.mxu0 %v2318_v53 }
  0xe3   :  { %1566 = vmatprep.subr.bf16.mxu1 %v2336_v6 }
  0xe5   :  { %1545 = vmatpush3.bf16.msra.mxu0 %v2337_v7 }
  0xe6   :  { %1567 = vmatpush3.bf16.msra.mxu1 %v2321_v51  ;;  %1546 = vmatprep.subr.bf16.mxu0 %v2322_v56 }
  0xe7   :  { %1568 = vmatprep.subr.bf16.mxu1 %v2323_v50 }
  0xe9   :  { %1547 = vmatpush3.bf16.msra.mxu0 %v2324_v52 }
  0xea   :  { %1569 = vmatpush3.bf16.msra.mxu1 %v2338_v8  ;;  %1548 = vmatprep.subr.bf16.mxu0 %v2339_v9 }
  0xeb   :  { %1570 = vmatprep.subr.bf16.mxu1 %v2340_v10 }
  0xed   :  { %1549 = vmatpush3.bf16.msra.mxu0 %v2341_v11 }
  0xee   :  { %1571 = vmatpush3.bf16.msra.mxu1 %v2329_v34  ;;  %1550 = vmatprep.subr.bf16.mxu0 %v2330_v36 }
  0xef   :  { %1572 = vmatprep.subr.bf16.mxu1 %v2342_v12 }
  0xf1   :  { %1551 = vmatpush3.bf16.msra.mxu0 %v2343_v13 }
  0xf2   :  { %1573 = vmatpush3.bf16.msra.mxu1 %v2344_v14  ;;  %1552 = vmatprep.subr.bf16.mxu0 %v2345_v15 }
  0xf3   :  { %1574 = vmatprep.subr.bf16.mxu1 %v2049_v49 }
  0xf5   :  { %1553 = vmatpush3.bf16.msra.mxu0 %v2054_v63 }
  0xf6   :  { %1575 = vmatpush3.bf16.msra.mxu1 %v2056_v44  ;;  %1585 = vmatprep.subr.bf16.mxu0 %v1772_v19 }
  0xf8   :  { %1123 = vmatmul.mubr.bf16.vlgmr.msra.gmra.mrb[20].mxu0 %v1006_v16 }
  0xf9   :  { %1586 = vmatpush3.bf16.msra.mxu0 %v1669_v17  ;;  %1163 = vmatmul.mubr.bf16.vlgmr.msra.gmra.mrb[20].mxu1 %v1008_v18 }
  0xfa   :  { %1587 = vmatprep.subr.bf16.mxu0 %v1772_v19  ;;  %1589 = vmatprep.mubr.msk.bf16.mxu0 %vm1773_vm0, %v1772_v19 }
  0xfd   :  { %1588 = vmatpush3.bf16.msra.mxu0 %v1670_v20 }
 0x100   :  { %1590 = vmatmul.mubr.msk.bf16.vlgmr.msra.gmra.mrb[24].mxu0 %vm1188_vm1, %v1171_v21 }
 0x12b   :  { %v1334_v22 = vpop.f32.mrb[0].mxu0 }
 0x12c   :  { %v1356_v23 = vpop.f32.mrb[0].mxu1  ;;  %v1335_v24 = vpop.f32.mrb[1].mxu0 }
 0x12d   :  { %v1357_v25 = vpop.f32.mrb[1].mxu1  ;;  %v1336_v26 = vadd.f32 %v1335_v24, %v1334_v22  ;;  %v1337_v28 = vpop.f32.mrb[2].mxu0 }
 0x12e   :  { %v1358_v27 = vadd.f32 %v1357_v25, %v1356_v23  ;;  %v1359_v29 = vpop.f32.mrb[2].mxu1  ;;  %v1338_v30 = vpop.f32.mrb[3].mxu0 }
 0x12f   :  { %v1360_v31 = vpop.f32.mrb[3].mxu1 }
 0x130   :  { %v717_v38 = vadd.f32 %v1358_v27, %v1336_v26 }
 0x14b   :  { %v1378_v39 = vpop.f32.mrb[4].mxu0 }
 0x14c   :  { %v1379_v54 = vpop.f32.mrb[5].mxu0  ;;  %v1400_v55 = vpop.f32.mrb[4].mxu1 }
 0x14d   :  { %v1380_v60 = vadd.f32 %v1379_v54, %v1378_v39  ;;  %v1381_v61 = vpop.f32.mrb[6].mxu0  ;;  %v1401_v44 = vpop.f32.mrb[5].mxu1 }
 0x14e   :  { %v1382_v58 = vpop.f32.mrb[7].mxu0  ;;  %v1402_v59 = vadd.f32 %v1401_v44, %v1400_v55  ;;  %v1403_v63 = vpop.f32.mrb[6].mxu1 }
 0x14f   :  { %v757_v46 = vadd.f32 %v1380_v60, %v717_v38  ;;  %v1404_v49 = vpop.f32.mrb[7].mxu1 }
 0x151   :  { %v797_v33 = vadd.f32 %v1402_v59, %v757_v46 }
 0x16b   :  { %v1422_v41 = vpop.f32.mrb[8].mxu0 }
 0x16c   :  { %v1423_v40 = vpop.f32.mrb[9].mxu0  ;;  %v1444_v42 = vpop.f32.mrb[8].mxu1 }
 0x16d   :  { %v1424_v32 = vadd.f32 %v1423_v40, %v1422_v41  ;;  %v1425_v35 = vpop.f32.mrb[10].mxu0  ;;  %v1445_v37 = vpop.f32.mrb[9].mxu1 }
 0x16e   :  { %v1426_v43 = vpop.f32.mrb[11].mxu0  ;;  %v1446_v53 = vadd.f32 %v1445_v37, %v1444_v42  ;;  %v1447_v36 = vpop.f32.mrb[10].mxu1 }
 0x16f   :  { %v837_v47 = vadd.f32 %v1424_v32, %v797_v33  ;;  %v1448_v51 = vpop.f32.mrb[11].mxu1 }
 0x171   :  { %v877_v56 = vadd.f32 %v1446_v53, %v837_v47 }
 0x18b   :  { %v1466_v50 = vpop.f32.mrb[12].mxu0 }
 0x18c   :  { %v1467_v52 = vpop.f32.mrb[13].mxu0  ;;  %v1488_v45 = vpop.f32.mrb[12].mxu1 }
 0x18d   :  { %v1468_v57 = vadd.f32 %v1467_v52, %v1466_v50  ;;  %v1469_v48 = vpop.f32.mrb[14].mxu0  ;;  %v1489_v62 = vpop.f32.mrb[13].mxu1 }
 0x18e   :  { %v1470_v34 = vpop.f32.mrb[15].mxu0  ;;  %v1490_v0 = vadd.f32 %v1489_v62, %v1488_v45  ;;  %v1491_v1 = vpop.f32.mrb[14].mxu1 }
 0x18f   :  { %v917_v2 = vadd.f32 %v1468_v57, %v877_v56  ;;  %v1492_v3 = vpop.f32.mrb[15].mxu1 }
 0x191   :  { %v957_v4 = vadd.f32 %v1490_v0, %v917_v2 }
 0x1ab   :  { %v1510_v5 = vpop.f32.mrb[16].mxu0 }
 0x1ac   :  { %v1532_v6 = vpop.f32.mrb[16].mxu1  ;;  %v1511_v7 = vpop.f32.mrb[17].mxu0 }
 0x1ad   :  { %v1512_v8 = vadd.f32 %v1511_v7, %v1510_v5  ;;  %v1533_v9 = vpop.f32.mrb[17].mxu1  ;;  %v1513_v10 = vpop.f32.mrb[18].mxu0 }
 0x1ae   :  { %v1534_v11 = vadd.f32 %v1533_v9, %v1532_v6  ;;  %v1514_v12 = vpop.f32.mrb[19].mxu0  ;;  %v1535_v13 = vpop.f32.mrb[18].mxu1 }
 0x1af   :  { %v1536_v14 = vpop.f32.mrb[19].mxu1 }
 0x1b0   :  { %v1085_v15 = vadd.f32 %v1534_v11, %v1512_v8 }
 0x1cb   :  { %v1554_v16 = vpop.f32.mrb[20].mxu0 }
 0x1cc   :  { %v1555_v17 = vpop.f32.mrb[21].mxu0  ;;  %v1576_v18 = vpop.f32.mrb[20].mxu1 }
 0x1cd   :  { %v1556_v19 = vadd.f32 %v1555_v17, %v1554_v16  ;;  %v1557_v20 = vpop.f32.mrb[22].mxu0  ;;  %v1577_v21 = vpop.f32.mrb[21].mxu1 }
 0x1ce   :  { %v1558_v22 = vpop.f32.mrb[23].mxu0  ;;  %v1578_v23 = vadd.f32 %v1577_v21, %v1576_v18  ;;  %v1579_v24 = vpop.f32.mrb[22].mxu1 }
 0x1cf   :  { %v1125_v25 = vadd.f32 %v1556_v19, %v1085_v15  ;;  %v1580_v26 = vpop.f32.mrb[23].mxu1 }
 0x1d1   :  { %v1165_v27 = vadd.f32 %v1578_v23, %v1125_v25 }
 0x1d3   :  { %v1170_v28 = vadd.f32 %v1165_v27, %v957_v4  ;;  %v1226_v29 = vpop.f32.mrb[24].mxu0 }
 0x1d4   :  { %1671 = vrcp.f32 %v1226_v29  ;;  %v1591_v30 = vpop.f32.mrb[25].mxu0 }
 0x1d5   :  { %v1229_v31 = vpop.f32.mrb[26].mxu0 }
 0x1d6   :  { %v1592_v38 = vpop.f32.mrb[27].mxu0 }
 0x1de   :  { %v1672_v39 = vpop.eup %1671 }
 0x1df   :  { %v1233_v54 = vmul.f32 %v1672_v39, %v1170_v28 }
 0x1e1   :  { %1234 = vst [vmem:[#allocation8] sm:$0xf] %v1233_v54 }
 0x1e2   :  { %1750 = shalt.err (!%p1747_p0)
}
 0x1e3   :  { %s1751_s30 = scalar_lea.hbm %s2237_s4, 64 }
 0x1e4   :  { %p1752_p1 = scmp.ne.s32.totalorder %s2237_s4, %s1751_s30  ;;  %p1755_p2 = scmp.lt.u32.totalorder %s1751_s30, %s2237_s4 }
 0x1e6   :  { %p1757_p3 = pnand %p1755_p2, %p1752_p1 }
 0x1e8   :  { %1760 = shalt.err (!%p1757_p3)
}
 0x1e9   :  { %1244 = dma.vmem_to_hbm [thread:$0]  %s1242_s26, 64, %s2237_s4, [#allocation4]  }
 0x1ea   :  { %1765 = dma.done.wait [#allocation4], 64  }
 0x1eb   :  { %1766 = vsyncadd [#allocation4], 4294967232 }
 0x1ec   :  { %1248 = vsyncpa [#allocation3], 1 }
 0x1ed   :  { %1249 = vsyncpa [#allocation6], 1 }
 0x1ee   :  { %1250 = vsyncpa [#allocation4], 1 }

</bundles_post_ra>
